<compile_context>
chip_gen: v5e
topology: v5e:2x2
jax: 0.10.0
libtpu: 0.0.40
codegen_flags: <defaults>
</compile_context>

<pallas_src>
import functools
import math

import jax
import jax.numpy as jnp
from jax import lax
from jax.experimental import pallas as pl
from jax.experimental.pallas import tpu as pltpu


def _round_up(x: int, m: int) -> int:
    return ((x + m - 1) // m) * m


def _contrastive_kernel(im_ref, s_ref, mdr_ref, mdc_ref,
                        row_out_ref, colp_out_ref, *, tm: int):
    j = pl.program_id(1)

    # Cosine-similarity tile on the MXU: contract the last dims of both
    # pre-normalized operands (no s.T materialization), f32 accumulation.
    scores = lax.dot_general(
        im_ref[...], s_ref[...],
        dimension_numbers=(((1,), (1,)), ((), ())),
        preferred_element_type=jnp.float32)               # (tm, tn) f32

    # Hinge losses with (margin - diag) pre-folded into the small f32 inputs.
    loss_s = jnp.maximum(scores + mdr_ref[...], 0.0)      # caption retrieval
    loss_im = jnp.maximum(scores + mdc_ref[...], 0.0)     # image retrieval

    # Per-column partial sums for this (i, j) tile: naturally lane-dense (1,tn).
    colp_out_ref[...] = jnp.sum(loss_im, axis=0, keepdims=True)

    # Per-row sums, relaid out lane-dense (1, tm) (one XLU relayout per tile)
    # and accumulated across the inner j axis in the j-resident output block.
    row_part = jnp.sum(loss_s, axis=1).reshape(1, tm)

    @pl.when(j == 0)
    def _init():
        row_out_ref[...] = row_part

    @pl.when(j > 0)
    def _accumulate():
        row_out_ref[...] += row_part


@functools.partial(
    jax.jit, static_argnames=("margin", "block_m", "block_n", "mxu_dtype"))
def contrastive_loss(im: jax.Array, s: jax.Array, margin: float = 0.2, *,
                     block_m: int = 256, block_n: int = 256,
                     mxu_dtype=jnp.bfloat16) -> jax.Array:
    assert im.ndim == 2 and im.shape == s.shape
    n, d = im.shape
    margin = float(margin)

    # ---- O(N*D) prologue, once, outside the grid: normalize rows + diag ------
    imf = im.astype(jnp.float32)
    sf = s.astype(jnp.float32)
    im_n = imf / jnp.sqrt(jnp.sum(imf * imf, axis=-1, keepdims=True) + 1e-12)
    s_n = sf / jnp.sqrt(jnp.sum(sf * sf, axis=-1, keepdims=True) + 1e-12)
    md = margin - jnp.sum(im_n * s_n, axis=-1)            # (n,) f32 = margin - diag

    # ---- lane-aligned tiles; pad N so VMEM is bounded by the tile size -------
    tm = max(128, min(_round_up(block_m, 128), _round_up(n, 128)))
    tn = max(128, min(_round_up(block_n, 128), _round_up(n, 128)))
    lcm = tm * tn // math.gcd(tm, tn)
    n_pad = _round_up(n, lcm)
    ni, nj = n_pad // tm, n_pad // tn

    im_p = jnp.pad(im_n.astype(mxu_dtype), ((0, n_pad - n), (0, 0)))
    s_p = jnp.pad(s_n.astype(mxu_dtype), ((0, n_pad - n), (0, 0)))
    md_p = jnp.pad(md, (0, n_pad - n))
    md_row = md_p.reshape(n_pad, 1)                       # broadcast over columns
    md_col = md_p.reshape(1, n_pad)                       # broadcast over rows

    kernel = functools.partial(_contrastive_kernel, tm=tm)

    grid_spec = pltpu.PrefetchScalarGridSpec(
        num_scalar_prefetch=0,
        grid=(ni, nj),
        in_specs=[
            pl.BlockSpec((tm, d), lambda i, j: (i, 0)),   # im rows, block i
            pl.BlockSpec((tn, d), lambda i, j: (j, 0)),   # s  rows, block j
            pl.BlockSpec((tm, 1), lambda i, j: (i, 0)),   # margin - diag (row side)
            pl.BlockSpec((1, tn), lambda i, j: (0, j)),   # margin - diag (col side)
        ],
        out_specs=[
            # Lane-dense per-row hinge sums, resident across the inner j axis.
            pl.BlockSpec((1, tm), lambda i, j: (0, i)),
            # Lane-dense per-column partial sums, one small block per (i, j).
            pl.BlockSpec((None, None, 1, tn), lambda i, j: (i, j, 0, 0)),
        ],
    )

    # TODO(synk): for very large D (>= ~4K) add a k grid axis over D with an
    # f32 (tm, tn) accumulator instead of full-D input blocks.
    mxu_bytes = jnp.dtype(mxu_dtype).itemsize
    vmem_est = (2 * (tm + tn) * d * mxu_bytes             # double-buffered embeddings
                + 4 * 4 * (tm + tn)                       # diag inputs + out blocks
                + 4 * tm * tn * 4)                        # f32 tile temporaries + slack
    vmem_limit = int(min(max(2 * vmem_est, 16 * 1024 * 1024), 64 * 1024 * 1024))

    row_out, col_partials = pl.pallas_call(
        kernel,
        out_shape=(
            jax.ShapeDtypeStruct((1, n_pad), jnp.float32),
            jax.ShapeDtypeStruct((ni, nj, 1, tn), jnp.float32),
        ),
        grid_spec=grid_spec,
        compiler_params=pltpu.CompilerParams(
            dimension_semantics=("parallel", "arbitrary"),
            vmem_limit_bytes=vmem_limit),
        cost_estimate=pl.CostEstimate(
            flops=2 * n_pad * n_pad * d + 8 * n_pad * n_pad,
            transcendentals=0,
            bytes_accessed=int((ni + 1) * n_pad * d * mxu_bytes
                               + (2 * ni + 2) * n_pad * 4)),
    )(im_p, s_p, md_row, md_col)

    # ---- tiny O(N) epilogue ---------------------------------------------------
    row_sums = row_out[0, :n]
    col_sums = jnp.sum(col_partials, axis=0).reshape(n_pad)[:n]
    # Analytic removal of (a) the diagonal hinge (== max(margin, 0), up to MXU
    # rounding of scores[k, k] vs the f32 diag) and (b) the exact hinge
    # contributed by zero-padded rows/columns (their scores are exactly 0).
    corr = max(margin, 0.0) + float(n_pad - n) * jnp.maximum(md, 0.0)
    return (row_sums + col_sums - 2.0 * corr) / float(n)


def _reference(im, s, margin=0.2):
    im_n = im / jnp.linalg.norm(im, axis=-1, keepdims=True)
    s_n = s / jnp.linalg.norm(s, axis=-1, keepdims=True)
    scores = jnp.dot(im_n, s_n.T, precision=lax.Precision.HIGHEST)
    diag = jnp.diag(scores)[:, None]
    loss_s = jnp.clip(margin + scores - diag, 0.0, None)
    loss_im = jnp.clip(margin + scores - diag.T, 0.0, None)
    eye = jnp.eye(scores.shape[0], dtype=bool)
    loss_s = jnp.where(eye, 0.0, loss_s)
    loss_im = jnp.where(eye, 0.0, loss_im)
    return loss_s.mean(1) + loss_im.mean(0)


if __name__ == "__main__":
    key = jax.random.PRNGKey(0)
    k_im, k_s, k_im2, k_s2 = jax.random.split(key, 4)

    # Small shape implied by the module (batch of paired embeddings).
    N, D = 8, 32
    im = jax.random.normal(k_im, (N, D), dtype=jnp.float32)
    s = jax.random.normal(k_s, (N, D), dtype=jnp.float32)
    ref = _reference(im, s, margin=0.2)

    # f32 MXU feed: tight tolerance.
    out_f32 = contrastive_loss(im, s, margin=0.2, mxu_dtype=jnp.float32)
    jax.block_until_ready(out_f32)
    assert out_f32.shape == (N,)
    assert jnp.allclose(out_f32, ref, atol=1e-4, rtol=1e-4), (out_f32, ref)

    # Default bf16 MXU feed: looser tolerance (bf16 rounding of scores).
    out_bf16 = contrastive_loss(im, s, margin=0.2)
    jax.block_until_ready(out_bf16)
    assert jnp.allclose(out_bf16, ref, atol=3e-2, rtol=3e-2), (out_bf16, ref)

    # Multi-tile (2x2 grid) with N not divisible by the block -> padding path,
    # row-accumulation across j, and column-partial reduction all exercised.
    N2, D2 = 200, 64
    im2 = jax.random.normal(k_im2, (N2, D2), dtype=jnp.float32)
    s2 = jax.random.normal(k_s2, (N2, D2), dtype=jnp.float32)
    ref2 = _reference(im2, s2, margin=0.2)
    out2 = contrastive_loss(im2, s2, margin=0.2, block_m=128, block_n=128,
                            mxu_dtype=jnp.float32)
    jax.block_until_ready(out2)
    assert out2.shape == (N2,)
    assert jnp.allclose(out2, ref2, atol=1e-4, rtol=1e-4), (out2, ref2)

    print("KERNEL_OK")
</pallas_src>

<mosaic_0001>
module attributes {stable_mosaic.version = 11 : i64} {
  func.func @_contrastive_kernel(%arg0: i32, %arg1: i32, %arg2: memref<128x32xf32, #tpu.memory_space<vmem>>, %arg3: memref<128x32xf32, #tpu.memory_space<vmem>>, %arg4: memref<128x1xf32, #tpu.memory_space<vmem>>, %arg5: memref<1x128xf32, #tpu.memory_space<vmem>>, %arg6: memref<1x128xf32, #tpu.memory_space<vmem>>, %arg7: memref<1x1x1x128xf32, #tpu.memory_space<vmem>>) attributes {dimension_semantics = [#tpu.dimension_semantics<parallel>, #tpu.dimension_semantics<arbitrary>], iteration_bounds = array<i64: 1, 1>, scalar_prefetch = 0 : i64, scratch_operands = 0 : i64, tpu.core_type = #tpu.core_type<tc>, window_params = [{transform_indices = @transform_0, window_bounds = array<i64: 128, 32>}, {transform_indices = @transform_1, window_bounds = array<i64: 128, 32>}, {transform_indices = @transform_2, window_bounds = array<i64: 128, 1>}, {transform_indices = @transform_3, window_bounds = array<i64: 1, 128>}, {transform_indices = @transform_4, window_bounds = array<i64: 1, 128>}, {transform_indices = @transform_5, window_bounds = array<i64: 1, 1, 1, 128>}]} {
    %c0 = arith.constant 0 : index
    %c0_0 = arith.constant 0 : index
    %0 = vector.load %arg2[%c0, %c0_0] : memref<128x32xf32, #tpu.memory_space<vmem>>, vector<128x32xf32>
    %c0_1 = arith.constant 0 : index
    %c0_2 = arith.constant 0 : index
    %1 = vector.load %arg3[%c0_1, %c0_2] : memref<128x32xf32, #tpu.memory_space<vmem>>, vector<128x32xf32>
    %cst = arith.constant dense<0.000000e+00> : vector<128x128xf32>
    %2 = tpu.matmul %0, %1, %cst {dimension_numbers = #tpu.dot_dimension_numbers<[1], [1], [0], [0], [0, 0, 1, 0], [], []>} : vector<128x32xf32>, vector<128x32xf32>, vector<128x128xf32> -> vector<128x128xf32>
    %c0_3 = arith.constant 0 : index
    %c0_4 = arith.constant 0 : index
    %3 = vector.load %arg4[%c0_3, %c0_4] : memref<128x1xf32, #tpu.memory_space<vmem>>, vector<128x1xf32>
    %4 = vector.broadcast %3 : vector<128x1xf32> to vector<128x128xf32>
    %5 = arith.addf %2, %4 : vector<128x128xf32>
    %cst_5 = arith.constant 0.000000e+00 : f32
    %6 = vector.broadcast %cst_5 : f32 to vector<128x128xf32>
    %7 = arith.maximumf %5, %6 : vector<128x128xf32>
    %c0_6 = arith.constant 0 : index
    %c0_7 = arith.constant 0 : index
    %8 = vector.load %arg5[%c0_6, %c0_7] : memref<1x128xf32, #tpu.memory_space<vmem>>, vector<1x128xf32>
    %9 = vector.broadcast %8 : vector<1x128xf32> to vector<128x128xf32>
    %10 = arith.addf %2, %9 : vector<128x128xf32>
    %cst_8 = arith.constant 0.000000e+00 : f32
    %11 = vector.broadcast %cst_8 : f32 to vector<128x128xf32>
    %12 = arith.maximumf %10, %11 : vector<128x128xf32>
    %cst_9 = arith.constant dense<0.000000e+00> : vector<128xf32>
    %13 = vector.multi_reduction <add>, %12, %cst_9 [0] : vector<128x128xf32> to vector<128xf32>
    %14 = vector.shape_cast %13 : vector<128xf32> to vector<1x128xf32>
    %c0_10 = arith.constant 0 : index
    %c0_11 = arith.constant 0 : index
    %c0_12 = arith.constant 0 : index
    %c0_13 = arith.constant 0 : index
    %15 = vector.load %arg7[%c0_10, %c0_11, %c0_12, %c0_13] : memref<1x1x1x128xf32, #tpu.memory_space<vmem>>, vector<1x1x1x128xf32>
    %16 = vector.shape_cast %15 : vector<1x1x1x128xf32> to vector<1x128xf32>
    %17 = vector.shape_cast %14 : vector<1x128xf32> to vector<1x1x1x128xf32>
    tpu.vector_store %arg7[%c0_10, %c0_11, %c0_12, %c0_13], %17 {strides = array<i32>} : memref<1x1x1x128xf32, #tpu.memory_space<vmem>>, vector<1x1x1x128xf32>,
    %cst_14 = arith.constant dense<0.000000e+00> : vector<128xf32>
    %18 = vector.multi_reduction <add>, %7, %cst_14 [1] : vector<128x128xf32> to vector<128xf32>
    %19 = vector.shape_cast %18 : vector<128xf32> to vector<1x128xf32>
    %c0_i32 = arith.constant 0 : i32
    %20 = arith.cmpi eq, %arg1, %c0_i32 : i32
    %21 = arith.extui %20 : i1 to i32
    %c0_i32_15 = arith.constant 0 : i32
    %22 = arith.cmpi ne, %21, %c0_i32_15 : i32
    scf.if %22 {
      %c0_18 = arith.constant 0 : index
      %c0_19 = arith.constant 0 : index
      %26 = vector.load %arg6[%c0_18, %c0_19] : memref<1x128xf32, #tpu.memory_space<vmem>>, vector<1x128xf32>
      tpu.vector_store %arg6[%c0_18, %c0_19], %19 {strides = array<i32>} : memref<1x128xf32, #tpu.memory_space<vmem>>, vector<1x128xf32>,
    } else {
    }
    %c0_i32_16 = arith.constant 0 : i32
    %23 = arith.cmpi sgt, %arg1, %c0_i32_16 : i32
    %24 = arith.extui %23 : i1 to i32
    %c0_i32_17 = arith.constant 0 : i32
    %25 = arith.cmpi ne, %24, %c0_i32_17 : i32
    scf.if %25 {
      %c0_18 = arith.constant 0 : index
      %c0_19 = arith.constant 0 : index
      %26 = vector.load %arg6[%c0_18, %c0_19] : memref<1x128xf32, #tpu.memory_space<vmem>>, vector<1x128xf32>
      %27 = arith.addf %26, %19 : vector<1x128xf32>
      %c0_20 = arith.constant 0 : index
      %c0_21 = arith.constant 0 : index
      %28 = vector.load %arg6[%c0_20, %c0_21] : memref<1x128xf32, #tpu.memory_space<vmem>>, vector<1x128xf32>
      tpu.vector_store %arg6[%c0_20, %c0_21], %27 {strides = array<i32>} : memref<1x128xf32, #tpu.memory_space<vmem>>, vector<1x128xf32>,
    } else {
    }
    return
  }
  func.func @transform_0(%arg0: i32, %arg1: i32) -> (i32, i32) {
    %c0_i32 = arith.constant 0 : i32
    %c0_i32_0 = arith.constant 0 : i32
    return %arg0, %c0_i32 : i32, i32
  }
  func.func @transform_1(%arg0: i32, %arg1: i32) -> (i32, i32) {
    %c0_i32 = arith.constant 0 : i32
    %c0_i32_0 = arith.constant 0 : i32
    return %arg1, %c0_i32 : i32, i32
  }
  func.func @transform_2(%arg0: i32, %arg1: i32) -> (i32, i32) {
    %c0_i32 = arith.constant 0 : i32
    %c0_i32_0 = arith.constant 0 : i32
    return %arg0, %c0_i32 : i32, i32
  }
  func.func @transform_3(%arg0: i32, %arg1: i32) -> (i32, i32) {
    %c0_i32 = arith.constant 0 : i32
    %c0_i32_0 = arith.constant 0 : i32
    return %c0_i32, %arg1 : i32, i32
  }
  func.func @transform_4(%arg0: i32, %arg1: i32) -> (i32, i32) {
    %c0_i32 = arith.constant 0 : i32
    %c0_i32_0 = arith.constant 0 : i32
    return %c0_i32, %arg0 : i32, i32
  }
  func.func @transform_5(%arg0: i32, %arg1: i32) -> (i32, i32, i32, i32) {
    %c0_i32 = arith.constant 0 : i32
    %c0_i32_0 = arith.constant 0 : i32
    %c0_i32_1 = arith.constant 0 : i32
    return %arg0, %arg1, %c0_i32, %c0_i32_0 : i32, i32, i32, i32
  }
}

</mosaic_0001>

<bundles_post_ra>
// kernel: contrastive_loss.1
= control target key start
LH: loop header
LB: loop body
LE: loop exit
PB: predicated region body
PF: predicated region fallthrough
CT: control target
= control target key end

     0   :  { %vm51_vm0 = vcmask 261120   ;;  %v1023_v1 = vmov 0   ;;  %vm456_vm1 = vcmask 130112   ;;  %vm460_vm2 = vcmask 195712   ;;  %s1309_s1 = inlined_call_operand.vmem [shape: f32[128,32], index: 1, kind: input, shape index: {}]   ;;  %s1310_s2 = inlined_call_operand.vmem [shape: f32[128,1], index: 2, kind: input, shape index: {}]   ;;  %s1311_s3 = inlined_call_operand.vmem [shape: f32[1,128], index: 3, kind: input, shape index: {}]   ;;  %s1312_s0 = inlined_call_operand.vmem [shape: f32[128,32], index: 0, kind: input, shape index: {}]   ;;  %s1313_s5 = inlined_call_operand.vmem [shape: f32[1,1,1,128], index: 5, kind: output, shape index: {1}]   ;;  %s1314_s4 = inlined_call_operand.vmem [shape: f32[1,128], index: 4, kind: output, shape index: {0}]  }
   0x1   :  { %v50_v0 = vld [vmem:[%s1309_s1 + $0x78] sm:$0xff]  ;;  %1019 = vset.pattern.permute.xlu0 %v1023_v1  ;;  %1020 = vset.pattern.permute.xlu1 %v1023_v1  ;;  %v49_v2 = vld [vmem:[%s1309_s1 + $0x70] sm:$0xff]  ;;  %v213_v3 = vld [vmem:[%s1310_s2] sm:$0xff]  ;;  %vm464_vm3 = vcmask 261312   ;;  %vm468_vm4 = vcmask 326912   ;;  %vm472_vm5 = vcmask 392512  }
   0x2   :  { %938 = vmatpush.xpose.msk.msra.mxu0 %vm51_vm0, %v50_v0  ;;  %970 = vmatpush.xpose.msk.msra.mxu1 %vm51_vm0, %v50_v0  ;;  %v48_v4 = vld [vmem:[%s1309_s1 + $0x68] sm:$0xff]  ;;  %v47_v6 = vld [vmem:[%s1309_s1 + $0x60] sm:$0xff]  ;;  %v46_v7 = vld [vmem:[%s1309_s1 + $0x58] sm:$0xff]  ;;  %vm476_vm6 = vcmask 458112   ;;  %vm480_vm7 = vcmask 523712   ;;  %vm484_vm8 = vcmask 589312  }
   0x3   :  { %971 = vmatpush.xpose.msk.msra.mxu2 %vm51_vm0, %v50_v0  ;;  %972 = vmatpush.xpose.msk.msra.mxu3 %vm51_vm0, %v50_v0  ;;  %v214_v5 = vld [vmem:[%s1310_s2 + $0x8] sm:$0xff]  ;;  %v215_v8 = vld [vmem:[%s1310_s2 + $0x10] sm:$0xff]  ;;  %v216_v12 = vld [vmem:[%s1310_s2 + $0x18] sm:$0xff]  ;;  %vm488_vm9 = vcmask 654912   ;;  %vm492_vm10 = vcmask 720512   ;;  %vm496_vm11 = vcmask 786112  }
   0x4   :  { %231 = vperm.xlu0 %1019, %v213_v3   ;;  %1021 = vset.pattern.permute.xlu2 %v1023_v1  ;;  %v219_v9 = vld [vmem:[%s1310_s2 + $0x30] sm:$0xff]  ;;  %v44_v11 = vld [vmem:[%s1309_s1 + $0x48] sm:$0xff]  ;;  %v217_v13 = vld [vmem:[%s1310_s2 + $0x20] sm:$0xff]  ;;  %vm500_vm12 = vcmask 851712   ;;  %vm504_vm13 = vcmask 917312   ;;  %vm508_vm14 = vcmask 982912  }
   0x5   :  { %241 = vperm.xlu1 %1020, %v215_v8   ;;  %v45_v10 = vld [vmem:[%s1309_s1 + $0x50] sm:$0xff]  ;;  %251 = vperm.xlu2 %1021, %v217_v13   ;;  %v222_v14 = vld [vmem:[%s1310_s2 + $0x48] sm:$0xff]  ;;  %v43_v15 = vld [vmem:[%s1309_s1 + $0x40] sm:$0xff]  ;;  %vm512_vm15 = vcmask 1048512  }
   0x6   :  { %939 = vmatpush.xpose.msk.msra.mxu0 %vm51_vm0, %v49_v2  ;;  %973 = vmatpush.xpose.msk.msra.mxu1 %vm51_vm0, %v49_v2  ;;  %v42_v16 = vld [vmem:[%s1309_s1 + $0x38] sm:$0xff]  ;;  %v225_v18 = vld [vmem:[%s1310_s2 + $0x60] sm:$0xff]  ;;  %v218_v19 = vld [vmem:[%s1310_s2 + $0x28] sm:$0xff] }
   0x7   :  { %974 = vmatpush.xpose.msk.msra.mxu2 %vm51_vm0, %v49_v2  ;;  %975 = vmatpush.xpose.msk.msra.mxu3 %vm51_vm0, %v49_v2  ;;  %v220_v17 = vld [vmem:[%s1310_s2 + $0x38] sm:$0xff]  ;;  %v41_v20 = vld [vmem:[%s1309_s1 + $0x30] sm:$0xff]  ;;  %v40_v22 = vld [vmem:[%s1309_s1 + $0x28] sm:$0xff] }
   0x8   :  { %v223_v21 = vld [vmem:[%s1310_s2 + $0x50] sm:$0xff]  ;;  %v228_v23 = vld [vmem:[%s1310_s2 + $0x78] sm:$0xff]  ;;  %v221_v24 = vld [vmem:[%s1310_s2 + $0x40] sm:$0xff] }
   0x9   :  { %v39_v25 = vld [vmem:[%s1309_s1 + $0x20] sm:$0xff]  ;;  %v226_v26 = vld [vmem:[%s1310_s2 + $0x68] sm:$0xff]  ;;  %v38_v27 = vld [vmem:[%s1309_s1 + $0x18] sm:$0xff] }
   0xa   :  { %940 = vmatpush.xpose.msk.msra.mxu0 %vm51_vm0, %v48_v4  ;;  %976 = vmatpush.xpose.msk.msra.mxu1 %vm51_vm0, %v48_v4  ;;  %v224_v28 = vld [vmem:[%s1310_s2 + $0x58] sm:$0xff]  ;;  %v37_v29 = vld [vmem:[%s1309_s1 + $0x10] sm:$0xff]  ;;  %v36_v30 = vld [vmem:[%s1309_s1 + $0x8] sm:$0xff] }
   0xb   :  { %977 = vmatpush.xpose.msk.msra.mxu2 %vm51_vm0, %v48_v4  ;;  %978 = vmatpush.xpose.msk.msra.mxu3 %vm51_vm0, %v48_v4  ;;  %v227_v31 = vld [vmem:[%s1310_s2 + $0x70] sm:$0xff]  ;;  %v35_v32 = vld [vmem:[%s1309_s1] sm:$0xff]  ;;  %v20_v37 = vld [vmem:[%s1312_s0 + $0x8] sm:$0xff] }
   0xc   :  { %236 = vperm.xlu0 %1019, %v214_v5   ;;  %v19_v33 = vld [vmem:[%s1312_s0] sm:$0xff]  ;;  %v24_v38 = vld [vmem:[%s1312_s0 + $0x28] sm:$0xff]  ;;  %v21_v41 = vld [vmem:[%s1312_s0 + $0x10] sm:$0xff] }
   0xd   :  { %246 = vperm.xlu1 %1020, %v216_v12   ;;  %256 = vperm.xlu2 %1021, %v218_v19   ;;  %v23_v34 = vld [vmem:[%s1312_s0 + $0x20] sm:$0xff]  ;;  %v28_v39 = vld [vmem:[%s1312_s0 + $0x48] sm:$0xff]  ;;  %v25_v42 = vld [vmem:[%s1312_s0 + $0x30] sm:$0xff] }
   0xe   :  { %941 = vmatpush.xpose.msk.msra.mxu0 %vm51_vm0, %v47_v6  ;;  %979 = vmatpush.xpose.msk.msra.mxu1 %vm51_vm0, %v47_v6  ;;  %v27_v35 = vld [vmem:[%s1312_s0 + $0x40] sm:$0xff]  ;;  %v32_v40 = vld [vmem:[%s1312_s0 + $0x68] sm:$0xff]  ;;  %v29_v43 = vld [vmem:[%s1312_s0 + $0x50] sm:$0xff] }
   0xf   :  { %980 = vmatpush.xpose.msk.msra.mxu2 %vm51_vm0, %v47_v6  ;;  %981 = vmatpush.xpose.msk.msra.mxu3 %vm51_vm0, %v47_v6  ;;  %v31_v36 = vld [vmem:[%s1312_s0 + $0x60] sm:$0xff]  ;;  %v33_v44 = vld [vmem:[%s1312_s0 + $0x70] sm:$0xff]  ;;  %v22_v45 = vld [vmem:[%s1312_s0 + $0x18] sm:$0xff] }
  0x10   :  { %v26_v46 = vld [vmem:[%s1312_s0 + $0x38] sm:$0xff]  ;;  %v1283_v8 = vld [vmem:[%s1311_s3] ss:$0 sm:$0xff] }
  0x11   :  { %v30_v47 = vld [vmem:[%s1312_s0 + $0x58] sm:$0xff] }
  0x12   :  { %942 = vmatpush.xpose.msk.msra.mxu0 %vm51_vm0, %v46_v7  ;;  %982 = vmatpush.xpose.msk.msra.mxu1 %vm51_vm0, %v46_v7  ;;  %v34_v48 = vld [vmem:[%s1312_s0 + $0x78] sm:$0xff] }
  0x13   :  { %983 = vmatpush.xpose.msk.msra.mxu2 %vm51_vm0, %v46_v7  ;;  %984 = vmatpush.xpose.msk.msra.mxu3 %vm51_vm0, %v46_v7 }
  0x14   :  { %261 = vperm.xlu0 %1019, %v219_v9  }
  0x15   :  { %266 = vperm.xlu1 %1020, %v220_v17   ;;  %271 = vperm.xlu2 %1021, %v221_v24  }
  0x16   :  { %943 = vmatpush.xpose.msk.msra.mxu0 %vm51_vm0, %v45_v10  ;;  %985 = vmatpush.xpose.msk.msra.mxu1 %vm51_vm0, %v45_v10 }
  0x17   :  { %986 = vmatpush.xpose.msk.msra.mxu2 %vm51_vm0, %v45_v10  ;;  %987 = vmatpush.xpose.msk.msra.mxu3 %vm51_vm0, %v45_v10 }
  0x1a   :  { %944 = vmatpush.xpose.msk.msra.mxu0 %vm51_vm0, %v44_v11  ;;  %988 = vmatpush.xpose.msk.msra.mxu1 %vm51_vm0, %v44_v11 }
  0x1b   :  { %989 = vmatpush.xpose.msk.msra.mxu2 %vm51_vm0, %v44_v11  ;;  %990 = vmatpush.xpose.msk.msra.mxu3 %vm51_vm0, %v44_v11 }
  0x1c   :  { %276 = vperm.xlu0 %1019, %v222_v14  }
  0x1d   :  { %281 = vperm.xlu1 %1020, %v223_v21   ;;  %286 = vperm.xlu2 %1021, %v224_v28  }
  0x1e   :  { %945 = vmatpush.xpose.msk.msra.mxu0 %vm51_vm0, %v43_v15  ;;  %991 = vmatpush.xpose.msk.msra.mxu1 %vm51_vm0, %v43_v15 }
  0x1f   :  { %992 = vmatpush.xpose.msk.msra.mxu2 %vm51_vm0, %v43_v15  ;;  %993 = vmatpush.xpose.msk.msra.mxu3 %vm51_vm0, %v43_v15 }
  0x22   :  { %946 = vmatpush.xpose.msk.msra.mxu0 %vm51_vm0, %v42_v16  ;;  %994 = vmatpush.xpose.msk.msra.mxu1 %vm51_vm0, %v42_v16 }
  0x23   :  { %995 = vmatpush.xpose.msk.msra.mxu2 %vm51_vm0, %v42_v16  ;;  %996 = vmatpush.xpose.msk.msra.mxu3 %vm51_vm0, %v42_v16 }
  0x24   :  { %291 = vperm.xlu0 %1019, %v225_v18  }
  0x25   :  { %296 = vperm.xlu1 %1020, %v226_v26   ;;  %301 = vperm.xlu2 %1021, %v227_v31  }
  0x26   :  { %947 = vmatpush.xpose.msk.msra.mxu0 %vm51_vm0, %v41_v20  ;;  %997 = vmatpush.xpose.msk.msra.mxu1 %vm51_vm0, %v41_v20 }
  0x27   :  { %998 = vmatpush.xpose.msk.msra.mxu2 %vm51_vm0, %v41_v20  ;;  %999 = vmatpush.xpose.msk.msra.mxu3 %vm51_vm0, %v41_v20 }
  0x2a   :  { %948 = vmatpush.xpose.msk.msra.mxu0 %vm51_vm0, %v40_v22  ;;  %1000 = vmatpush.xpose.msk.msra.mxu1 %vm51_vm0, %v40_v22 }
  0x2b   :  { %1001 = vmatpush.xpose.msk.msra.mxu2 %vm51_vm0, %v40_v22  ;;  %1002 = vmatpush.xpose.msk.msra.mxu3 %vm51_vm0, %v40_v22 }
  0x2c   :  { %306 = vperm.xlu0 %1019, %v228_v23  }
  0x2e   :  { %949 = vmatpush.xpose.msk.msra.mxu0 %vm51_vm0, %v39_v25  ;;  %1003 = vmatpush.xpose.msk.msra.mxu1 %vm51_vm0, %v39_v25 }
  0x2f   :  { %1004 = vmatpush.xpose.msk.msra.mxu2 %vm51_vm0, %v39_v25  ;;  %1005 = vmatpush.xpose.msk.msra.mxu3 %vm51_vm0, %v39_v25 }
  0x32   :  { %950 = vmatpush.xpose.msk.msra.mxu0 %vm51_vm0, %v38_v27  ;;  %1006 = vmatpush.xpose.msk.msra.mxu1 %vm51_vm0, %v38_v27 }
  0x33   :  { %1007 = vmatpush.xpose.msk.msra.mxu2 %vm51_vm0, %v38_v27  ;;  %1008 = vmatpush.xpose.msk.msra.mxu3 %vm51_vm0, %v38_v27 }
  0x36   :  { %951 = vmatpush.xpose.msk.msra.mxu0 %vm51_vm0, %v37_v29  ;;  %1009 = vmatpush.xpose.msk.msra.mxu1 %vm51_vm0, %v37_v29 }
  0x37   :  { %1010 = vmatpush.xpose.msk.msra.mxu2 %vm51_vm0, %v37_v29  ;;  %1011 = vmatpush.xpose.msk.msra.mxu3 %vm51_vm0, %v37_v29 }
  0x3a   :  { %952 = vmatpush.xpose.msk.msra.mxu0 %vm51_vm0, %v36_v30  ;;  %1012 = vmatpush.xpose.msk.msra.mxu1 %vm51_vm0, %v36_v30 }
  0x3b   :  { %1013 = vmatpush.xpose.msk.msra.mxu2 %vm51_vm0, %v36_v30  ;;  %1014 = vmatpush.xpose.msk.msra.mxu3 %vm51_vm0, %v36_v30 }
  0x3e   :  { %953 = vmatpush.xpose.msk.msra.mxu0 %vm51_vm0, %v35_v32  ;;  %1015 = vmatpush.xpose.msk.msra.mxu1 %vm51_vm0, %v35_v32 }
  0x3f   :  { %1016 = vmatpush.xpose.msk.msra.mxu2 %vm51_vm0, %v35_v32  ;;  %1017 = vmatpush.xpose.msk.msra.mxu3 %vm51_vm0, %v35_v32 }
  0x41   :  { %954 = vmatmul.msk.f32.vlgmr.msra.gmra.mxu0 %vm51_vm0, %v19_v33  ;;  %958 = vmatmul.msk.f32.vlgmr.msra.gmra.mxu1 %vm51_vm0, %v23_v34 }
  0x42   :  { %962 = vmatmul.msk.f32.vlgmr.msra.gmra.mxu2 %vm51_vm0, %v27_v35  ;;  %966 = vmatmul.msk.f32.vlgmr.msra.gmra.mxu3 %vm51_vm0, %v31_v36 }
  0x49   :  { %955 = vmatmul.msk.f32.gmra.mxu0 %vm51_vm0, %v20_v37  ;;  %959 = vmatmul.msk.f32.gmra.mxu1 %vm51_vm0, %v24_v38 }
  0x4a   :  { %963 = vmatmul.msk.f32.gmra.mxu2 %vm51_vm0, %v28_v39  ;;  %967 = vmatmul.msk.f32.gmra.mxu3 %vm51_vm0, %v32_v40 }
  0x51   :  { %956 = vmatmul.msk.f32.gmra.mxu0 %vm51_vm0, %v21_v41  ;;  %960 = vmatmul.msk.f32.gmra.mxu1 %vm51_vm0, %v25_v42 }
  0x52   :  { %964 = vmatmul.msk.f32.gmra.mxu2 %vm51_vm0, %v29_v43  ;;  %968 = vmatmul.msk.f32.gmra.mxu3 %vm51_vm0, %v33_v44 }
  0x59   :  { %957 = vmatmul.msk.f32.gmra.mxu0 %vm51_vm0, %v22_v45  ;;  %961 = vmatmul.msk.f32.gmra.mxu1 %vm51_vm0, %v26_v46 }
  0x5a   :  { %965 = vmatmul.msk.f32.gmra.mxu2 %vm51_vm0, %v30_v47  ;;  %969 = vmatmul.msk.f32.gmra.mxu3 %vm51_vm0, %v34_v48 }
  0x5f   :  { %v252_v50 = vpop.permute.xlu2 %251 }
  0x67   :  { %v257_v53 = vpop.permute.xlu2 %256 }
  0x6f   :  { %v272_v60 = vpop.permute.xlu2 %271 }
  0x76   :  { %v232_v49 = vpop.permute.xlu0 %231 }
  0x77   :  { %v242_v51 = vpop.permute.xlu1 %241 }
  0x7e   :  { %v237_v52 = vpop.permute.xlu0 %236 }
  0x7f   :  { %v247_v57 = vpop.permute.xlu1 %246 }
  0x86   :  { %v262_v59 = vpop.permute.xlu0 %261 }
  0x87   :  { %v267_v4 = vpop.permute.xlu1 %266 }
  0x8e   :  { %v277_v7 = vpop.permute.xlu0 %276 }
  0x8f   :  { %v282_v20 = vpop.permute.xlu1 %281 }
  0xbe   :  { %v165_v54 = vpop.f32.mrf.mxu0  ;;  %v177_v55 = vpop.f32.mrf.mxu1 }
  0xbf   :  { %v309_v56 = vadd.f32 %v232_v49, %v165_v54  ;;  %v313_v61 = vadd.f32 %v252_v50, %v177_v55  ;;  %v345_v16 = vadd.f32 %v1283_v8, %v165_v54  ;;  %v349_v28 = vadd.f32 %v1283_v8, %v177_v55  ;;  %v287_v54 = vpop.permute.xlu2 %286 }
  0xc1   :  { %v325_v58 = vmax.f32 %v309_v56, 0.0  ;;  %v329_v3 = vmax.f32 %v313_v61, 0.0  ;;  %v361_v21 = vmax.f32 %v345_v16, 0.0  ;;  %v365_v39 = vmax.f32 %v349_v28, 0.0  ;;  %v292_v61 = vpop.permute.xlu0 %291 }
  0xc3   :  { %399 = vadd.xlane.f32.xlu1 %v325_v58 }
  0xc5   :  { %v189_v62 = vpop.f32.mrf.mxu2  ;;  %v1278_v5 = vpop.f32.mrf.mxu3 }
  0xc6   :  { %v317_v63 = vadd.f32 %v272_v60, %v189_v62  ;;  %v168_v0 = vpop.f32.mrf.mxu0  ;;  %v180_v1 = vpop.f32.mrf.mxu1  ;;  %v353_v48 = vadd.f32 %v1283_v8, %v189_v62 }
  0xc7   :  { %v310_v6 = vadd.f32 %v237_v52, %v168_v0  ;;  %v346_v12 = vadd.f32 %v1283_v8, %v168_v0  ;;  %v314_v19 = vadd.f32 %v257_v53, %v180_v1  ;;  %v350_v31 = vadd.f32 %v1283_v8, %v180_v1 }
  0xc8   :  { %v333_v2 = vmax.f32 %v317_v63, 0.0 }
  0xc9   :  { %v326_v15 = vmax.f32 %v310_v6, 0.0  ;;  %v362_v18 = vmax.f32 %v346_v12, 0.0  ;;  %v330_v33 = vmax.f32 %v314_v19, 0.0  ;;  %v366_v44 = vmax.f32 %v350_v31, 0.0 }
  0xca   :  { %415 = vadd.xlane.f32.xlu2 %v333_v2  ;;  %v321_v2 = vadd.f32 %v292_v61, %v1278_v5 }
  0xcb   :  { %407 = vadd.xlane.f32.xlu1 %v329_v3  ;;  %v377_v29 = vadd.f32 %v362_v18, %v361_v21  ;;  %v302_v18 = vpop.permute.xlu2 %301 }
  0xcc   :  { %v337_v16 = vmax.f32 %v321_v2, 0.0 }
  0xcd   :  { %v192_v9 = vpop.f32.mrf.mxu2  ;;  %v204_v25 = vpop.f32.mrf.mxu3 }
  0xce   :  { %v318_v10 = vadd.f32 %v277_v7, %v192_v9  ;;  %v171_v11 = vpop.f32.mrf.mxu0  ;;  %v183_v13 = vpop.f32.mrf.mxu1  ;;  %v354_v55 = vadd.f32 %v1283_v8, %v192_v9  ;;  %v357_v7 = vadd.f32 %v1283_v8, %v1278_v5 }
  0xcf   :  { %v347_v17 = vadd.f32 %v1283_v8, %v171_v11  ;;  %v311_v22 = vadd.f32 %v242_v51, %v171_v11  ;;  %v351_v35 = vadd.f32 %v1283_v8, %v183_v13  ;;  %v315_v45 = vadd.f32 %v262_v59, %v183_v13  ;;  %v307_v5 = vpop.permute.xlu0 %306 }
  0xd0   :  { %v334_v14 = vmax.f32 %v318_v10, 0.0  ;;  %v369_v59 = vmax.f32 %v353_v48, 0.0  ;;  %v370_v3 = vmax.f32 %v354_v55, 0.0  ;;  %v358_v13 = vadd.f32 %v1283_v8, %v204_v25 }
  0xd1   :  { %v363_v23 = vmax.f32 %v347_v17, 0.0  ;;  %v327_v38 = vmax.f32 %v311_v22, 0.0  ;;  %v367_v46 = vmax.f32 %v351_v35, 0.0  ;;  %v331_v60 = vmax.f32 %v315_v45, 0.0 }
  0xd2   :  { %417 = vadd.xlane.f32.xlu0 %v334_v14  ;;  %401 = vadd.xlane.f32.xlu2 %v326_v15  ;;  %v373_v19 = vmax.f32 %v357_v7, 0.0 }
  0xd3   :  { %v378_v34 = vadd.f32 %v377_v29, %v363_v23 }
  0xd5   :  { %v195_v24 = vpop.f32.mrf.mxu2  ;;  %v207_v51 = vpop.f32.mrf.mxu3 }
  0xd6   :  { %v319_v26 = vadd.f32 %v282_v20, %v195_v24  ;;  %v174_v27 = vpop.f32.mrf.mxu0  ;;  %v186_v37 = vpop.f32.mrf.mxu1  ;;  %v355_v63 = vadd.f32 %v1283_v8, %v195_v24  ;;  %v359_v20 = vadd.f32 %v1283_v8, %v207_v51  ;;  %v323_v23 = vadd.f32 %v302_v18, %v207_v51 }
  0xd7   :  { %v348_v30 = vadd.f32 %v1283_v8, %v174_v27  ;;  %v352_v41 = vadd.f32 %v1283_v8, %v186_v37  ;;  %v312_v42 = vadd.f32 %v247_v57, %v174_v27  ;;  %v316_v43 = vadd.f32 %v267_v4, %v186_v37  ;;  %v297_v57 = vpop.permute.xlu1 %296 }
  0xd8   :  { %v335_v32 = vmax.f32 %v319_v26, 0.0  ;;  %v322_v62 = vadd.f32 %v297_v57, %v204_v25  ;;  %v371_v9 = vmax.f32 %v355_v63, 0.0  ;;  %v374_v24 = vmax.f32 %v358_v13, 0.0 }
  0xd9   :  { %v364_v36 = vmax.f32 %v348_v30, 0.0  ;;  %v368_v49 = vmax.f32 %v352_v41, 0.0  ;;  %v328_v52 = vmax.f32 %v312_v42, 0.0  ;;  %v332_v53 = vmax.f32 %v316_v43, 0.0 }
  0xda   :  { %419 = vadd.xlane.f32.xlu1 %v335_v32  ;;  %409 = vadd.xlane.f32.xlu2 %v330_v33  ;;  %v338_v12 = vmax.f32 %v322_v62, 0.0  ;;  %v375_v25 = vmax.f32 %v359_v20, 0.0  ;;  %v339_v30 = vmax.f32 %v323_v23, 0.0 }
  0xdb   :  { %v379_v40 = vadd.f32 %v378_v34, %v364_v36  ;;  %403 = vadd.xlane.f32.xlu0 %v327_v38 }
  0xdd   :  { %v380_v47 = vadd.f32 %v379_v40, %v365_v39  ;;  %v198_v58 = vpop.f32.mrf.mxu2  ;;  %v210_v17 = vpop.f32.mrf.mxu3 }
  0xde   :  { %v320_v1 = vadd.f32 %v287_v54, %v198_v58  ;;  %v356_v6 = vadd.f32 %v1283_v8, %v198_v58  ;;  %v360_v22 = vadd.f32 %v1283_v8, %v210_v17  ;;  %v324_v27 = vadd.f32 %v307_v5, %v210_v17 }
  0xdf   :  { %v381_v50 = vadd.f32 %v380_v47, %v366_v44  ;;  %v451_v44 = vlaneseq }
  0xe0   :  { %v336_v11 = vmax.f32 %v320_v1, 0.0  ;;  %v372_v14 = vmax.f32 %v356_v6, 0.0  ;;  %v376_v28 = vmax.f32 %v360_v22, 0.0  ;;  %v340_v31 = vmax.f32 %v324_v27, 0.0 }
  0xe1   :  { %v382_v56 = vadd.f32 %v381_v50, %v367_v46  ;;  %v452_v45 = vand.u32 127, %v451_v44 }
  0xe2   :  { %413 = vadd.xlane.f32.xlu1 %v332_v53  ;;  %405 = vadd.xlane.f32.xlu2 %v328_v52 }
  0xe3   :  { %v383_v0 = vadd.f32 %v382_v56, %v368_v49  ;;  %411 = vadd.xlane.f32.xlu0 %v331_v60  ;;  %v454_v48 = vadd.s32 4294967288, %v452_v45  ;;  %v458_v50 = vadd.s32 4294967280, %v452_v45  ;;  %v462_v52 = vadd.s32 4294967272, %v452_v45 }
  0xe4   :  { %v466_v53 = vadd.s32 4294967264, %v452_v45  ;;  %v470_v56 = vadd.s32 4294967256, %v452_v45  ;;  %v474_v58 = vadd.s32 4294967248, %v452_v45  ;;  %v478_v57 = vadd.s32 4294967240, %v452_v45 }
  0xe5   :  { %v384_v4 = vadd.f32 %v383_v0, %v369_v59  ;;  %v482_v0 = vadd.s32 4294967232, %v452_v45  ;;  %v490_v7 = vadd.s32 4294967216, %v452_v45  ;;  %v494_v13 = vadd.s32 4294967208, %v452_v45 }
  0xe6   :  { %v498_v17 = vadd.s32 4294967200, %v452_v45  ;;  %v502_v27 = vadd.s32 4294967192, %v452_v45 }
  0xe7   :  { %v385_v10 = vadd.f32 %v384_v4, %v370_v3  ;;  %v486_v3 = vadd.s32 4294967224, %v452_v45 }
  0xe9   :  { %v386_v15 = vadd.f32 %v385_v10, %v371_v9 }
  0xea   :  { %425 = vadd.xlane.f32.xlu1 %v338_v12  ;;  %421 = vadd.xlane.f32.xlu2 %v336_v11 }
  0xeb   :  { %v387_v21 = vadd.f32 %v386_v15, %v372_v14  ;;  %423 = vadd.xlane.f32.xlu0 %v337_v16 }
  0xed   :  { %v388_v26 = vadd.f32 %v387_v21, %v373_v19 }
  0xef   :  { %v389_v29 = vadd.f32 %v388_v26, %v374_v24 }
  0xf1   :  { %v390_v32 = vadd.f32 %v389_v29, %v375_v25  ;;  %v506_v29 = vadd.s32 4294967184, %v452_v45 }
  0xf2   :  { %427 = vadd.xlane.f32.xlu2 %v339_v30  ;;  %v510_v30 = vadd.s32 4294967176, %v452_v45 }
  0xf3   :  { %v391_v33 = vadd.f32 %v390_v32, %v376_v28  ;;  %429 = vadd.xlane.f32.xlu0 %v340_v31 }
  0xf5   :  { %v392_v34 = vrot.slane %v391_v33, 4 }
  0xf7   :  { %v393_v35 = vadd.f32 %v392_v34, %v391_v33 }
  0xf9   :  { %v394_v36 = vrot.slane %v393_v35, 2 }
  0xfb   :  { %v395_v37 = vadd.f32 %v394_v36, %v393_v35 }
  0xfd   :  { %v396_v8 = vrot.slane %v395_v37, 1 }
  0xff   :  { %v397_v38 = vadd.f32 %v396_v8, %v395_v37 }
 0x101   :  { %398 = vst [vmem:[%s1313_s5] sm:$0x1] %v397_v38 }
 0x136   :  { %v400_v39 = vpop.xlane.xlu1 %399 }
 0x137   :  { %v453_v55 = vperm.slane %v400_v39, %v452_v45 }
 0x13d   :  { %v416_v40 = vpop.xlane.xlu2 %415 }
 0x13e   :  { %v408_v41 = vpop.xlane.xlu1 %407  ;;  %v483_v14 = vperm.slane %v416_v40, %v482_v0 }
 0x13f   :  { %v467_v62 = vperm.slane %v408_v41, %v466_v53 }
 0x145   :  { %v418_v42 = vpop.xlane.xlu0 %417  ;;  %v402_v43 = vpop.xlane.xlu2 %401 }
 0x146   :  { %v455_v51 = vperm.slane %v402_v43, %v454_v48  ;;  %v487_v16 = vperm.slane %v418_v42, %v486_v3 }
 0x148   :  { %v457_v61 = vsel %vm456_vm1, %v455_v51, %v453_v55 }
 0x14d   :  { %v420_v46 = vpop.xlane.xlu1 %419  ;;  %v410_v47 = vpop.xlane.xlu2 %409 }
 0x14e   :  { %v404_v49 = vpop.xlane.xlu0 %403  ;;  %v471_v4 = vperm.slane %v410_v47, %v470_v56  ;;  %v491_v19 = vperm.slane %v420_v46, %v490_v7 }
 0x14f   :  { %v459_v54 = vperm.slane %v404_v49, %v458_v50 }
 0x151   :  { %v461_v1 = vsel %vm460_vm2, %v459_v54, %v457_v61 }
 0x155   :  { %v406_v60 = vpop.xlane.xlu2 %405  ;;  %v414_v2 = vpop.xlane.xlu1 %413 }
 0x156   :  { %v412_v59 = vpop.xlane.xlu0 %411  ;;  %v463_v63 = vperm.slane %v406_v60, %v462_v52  ;;  %v479_v11 = vperm.slane %v414_v2, %v478_v57 }
 0x157   :  { %v475_v9 = vperm.slane %v412_v59, %v474_v58 }
 0x158   :  { %v465_v6 = vsel %vm464_vm3, %v463_v63, %v461_v1 }
 0x159   :  { %v469_v10 = vsel %vm468_vm4, %v467_v62, %v465_v6 }
 0x15a   :  { %v473_v12 = vsel %vm472_vm5, %v471_v4, %v469_v10 }
 0x15b   :  { %v477_v15 = vsel %vm476_vm6, %v475_v9, %v473_v12 }
 0x15c   :  { %v481_v18 = vsel %vm480_vm7, %v479_v11, %v477_v15 }
 0x15d   :  { %v485_v20 = vsel %vm484_vm8, %v483_v14, %v481_v18  ;;  %v422_v21 = vpop.xlane.xlu2 %421  ;;  %v426_v28 = vpop.xlane.xlu1 %425 }
 0x15e   :  { %v424_v22 = vpop.xlane.xlu0 %423  ;;  %v489_v5 = vsel %vm488_vm9, %v487_v16, %v485_v20  ;;  %v495_v23 = vperm.slane %v422_v21, %v494_v13  ;;  %v503_v32 = vperm.slane %v426_v28, %v502_v27 }
 0x15f   :  { %v493_v24 = vsel %vm492_vm10, %v491_v19, %v489_v5  ;;  %v499_v26 = vperm.slane %v424_v22, %v498_v17 }
 0x160   :  { %v497_v25 = vsel %vm496_vm11, %v495_v23, %v493_v24 }
 0x161   :  { %v501_v31 = vsel %vm500_vm12, %v499_v26, %v497_v25 }
 0x162   :  { %v505_v37 = vsel %vm504_vm13, %v503_v32, %v501_v31 }
 0x165   :  { %v428_v33 = vpop.xlane.xlu2 %427 }
 0x166   :  { %v430_v34 = vpop.xlane.xlu0 %429  ;;  %v507_v35 = vperm.slane %v428_v33, %v506_v29 }
 0x167   :  { %v511_v36 = vperm.slane %v430_v34, %v510_v30 }
 0x168   :  { %v509_v8 = vsel %vm508_vm14, %v507_v35, %v505_v37 }
 0x169   :  { %v513_v38 = vsel %vm512_vm15, %v511_v36, %v509_v8 }
 0x16a   :  { %515 = vst [vmem:[%s1314_s4] sm:$0x1] %v513_v38 }

</bundles_post_ra>
